<compile_context>
chip_gen: v7x
topology: tpu7x:2x2x1
jax: 0.10.0
libtpu: 0.0.40
codegen_flags: <defaults>
</compile_context>

<pallas_src>
import functools

import jax
import jax.numpy as jnp
from jax.experimental import pallas as pl
from jax.experimental.pallas import tpu as pltpu

HIDDEN_SIZE = 256
INPUT_SIZE = 36
NUM_LAYERS = 1
OUTPUT_SIZE = 36


def rnn_kernel(x_ref, w_ih_t_ref, w_hh_t_ref, b_ref, w_fc_t_ref, b_fc_ref,
               out_ref, *, seq_len, batch_pad):
    """Single-invocation kernel: whole sequence processed in one body.

    x_ref:      (S*Bp, I)  time-major rows (row = t*Bp + b)
    w_ih_t_ref: (I, H)     W_ih^T
    w_hh_t_ref: (H, H)     W_hh^T
    b_ref:      (1, H)     b_ih + b_hh (pre-summed)
    w_fc_t_ref: (H, O)     W_fc^T
    b_fc_ref:   (1, O)
    out_ref:    (Bp, O)
    """
    # Hoisted input projection: one batched matmul, off the serial chain.
    xw = (jnp.dot(x_ref[...], w_ih_t_ref[...],
                  preferred_element_type=jnp.float32)
          + b_ref[...])                                   # (S*Bp, H)

    w_hh_t = w_hh_t_ref[...]                              # (H, H) stays resident
    h = jnp.zeros((batch_pad, w_hh_t.shape[1]), jnp.float32)

    # Fully unrolled serial recurrence (S is small & static). Only the
    # (Bp,H)x(H,H) matmul + tanh remain on the sequential critical path.
    for t in range(seq_len):
        x_t = xw[t * batch_pad:(t + 1) * batch_pad, :]    # static, sublane-aligned
        h = jnp.tanh(
            jnp.dot(h, w_hh_t, preferred_element_type=jnp.float32) + x_t)

    logits = (jnp.dot(h, w_fc_t_ref[...],
                      preferred_element_type=jnp.float32)
              + b_fc_ref[...])
    out_ref[...] = jax.nn.sigmoid(logits).astype(out_ref.dtype)


def rnn_forward(x, params):
    """x: (B, S, I) float32, batch_first like the PyTorch module.

    Returns (B, OUTPUT_SIZE) float32.
    """
    B, S, I = x.shape
    H = params["w_hh"].shape[0]
    O = params["w_fc"].shape[0]

    # Pad batch to a full sublane group so MXU/VPU rows are unmasked.
    B_pad = max(8, ((B + 7) // 8) * 8)

    x_tm = jnp.transpose(x, (1, 0, 2))                    # (S, B, I) time-major
    x_tm = jnp.pad(x_tm, ((0, 0), (0, B_pad - B), (0, 0)))
    x_flat = x_tm.reshape(S * B_pad, I)                   # row = t*B_pad + b

    w_ih_t = params["w_ih"].T                             # (I, H)
    w_hh_t = params["w_hh"].T                             # (H, H)
    w_fc_t = params["w_fc"].T                             # (H, O)
    b = (params["b_ih"] + params["b_hh"]).reshape(1, H)   # pre-summed biases
    b_fc = params["b_fc"].reshape(1, O)

    vmem = pltpu.MemorySpace.VMEM
    kernel = functools.partial(rnn_kernel, seq_len=S, batch_pad=B_pad)

    out_pad = pl.pallas_call(
        kernel,
        out_shape=jax.ShapeDtypeStruct((B_pad, O), jnp.float32),
        in_specs=[pl.BlockSpec(memory_space=vmem)] * 6,   # full arrays in VMEM
        out_specs=pl.BlockSpec(memory_space=vmem),
    )(x_flat, w_ih_t, w_hh_t, b, w_fc_t, b_fc)

    return out_pad[:B]


def init_params(key, input_size, hidden_size, output_size):
    """Deterministic init mimicking PyTorch's U(-1/sqrt(H), 1/sqrt(H))."""
    ks = jax.random.split(key, 6)
    k_rnn = 1.0 / jnp.sqrt(hidden_size)
    k_fc = 1.0 / jnp.sqrt(hidden_size)
    u = lambda k, shape, bound: jax.random.uniform(
        k, shape, jnp.float32, -bound, bound)
    return {
        "w_ih": u(ks[0], (hidden_size, input_size), k_rnn),
        "w_hh": u(ks[1], (hidden_size, hidden_size), k_rnn),
        "b_ih": u(ks[2], (hidden_size,), k_rnn),
        "b_hh": u(ks[3], (hidden_size,), k_rnn),
        "w_fc": u(ks[4], (output_size, hidden_size), k_fc),
        "b_fc": u(ks[5], (output_size,), k_fc),
    }


def rnn_forward_ref(x, params):
    """Pure-JAX reference of the PyTorch forward for verification."""
    B = x.shape[0]
    H = params["w_hh"].shape[0]
    h = jnp.zeros((B, H), jnp.float32)

    def step(h, x_t):
        h_new = jnp.tanh(x_t @ params["w_ih"].T + params["b_ih"]
                         + h @ params["w_hh"].T + params["b_hh"])
        return h_new, None

    h_last, _ = jax.lax.scan(step, h, jnp.transpose(x, (1, 0, 2)))
    return jax.nn.sigmoid(h_last @ params["w_fc"].T + params["b_fc"])


if __name__ == "__main__":
    key = jax.random.PRNGKey(0)
    k_x, k_p = jax.random.split(key)

    B, S = 2, 8
    x = jax.random.normal(k_x, (B, S, INPUT_SIZE), jnp.float32)
    params = init_params(k_p, INPUT_SIZE, HIDDEN_SIZE, OUTPUT_SIZE)

    fwd = jax.jit(rnn_forward)
    out = jax.block_until_ready(fwd(x, params))

    ref = jax.block_until_ready(rnn_forward_ref(x, params))
    assert out.shape == (B, OUTPUT_SIZE)
    assert jnp.allclose(out, ref, atol=1e-4, rtol=1e-4)

    print("KERNEL_OK")
</pallas_src>

<mosaic_0001>
module attributes {stable_mosaic.version = 11 : i64} {
  func.func @rnn_kernel(%arg0: memref<64x36xf32, #tpu.memory_space<vmem>>, %arg1: memref<36x256xf32, #tpu.memory_space<vmem>>, %arg2: memref<256x256xf32, #tpu.memory_space<vmem>>, %arg3: memref<1x256xf32, #tpu.memory_space<vmem>>, %arg4: memref<256x36xf32, #tpu.memory_space<vmem>>, %arg5: memref<1x36xf32, #tpu.memory_space<vmem>>, %arg6: memref<8x36xf32, #tpu.memory_space<vmem>>) attributes {dimension_semantics = [], scalar_prefetch = 0 : i64, scratch_operands = 0 : i64, tpu.core_type = #tpu.core_type<tc>} {
    %c0 = arith.constant 0 : index
    %c0_0 = arith.constant 0 : index
    %0 = vector.load %arg0[%c0, %c0_0] : memref<64x36xf32, #tpu.memory_space<vmem>>, vector<64x36xf32>
    %c0_1 = arith.constant 0 : index
    %c0_2 = arith.constant 0 : index
    %1 = vector.load %arg1[%c0_1, %c0_2] : memref<36x256xf32, #tpu.memory_space<vmem>>, vector<36x256xf32>
    %cst = arith.constant dense<0.000000e+00> : vector<64x256xf32>
    %2 = tpu.matmul %0, %1, %cst {dimension_numbers = #tpu.dot_dimension_numbers<[1], [0], [0], [1], [0, 0, 1, 1], [], []>} : vector<64x36xf32>, vector<36x256xf32>, vector<64x256xf32> -> vector<64x256xf32>
    %c0_3 = arith.constant 0 : index
    %c0_4 = arith.constant 0 : index
    %3 = vector.load %arg3[%c0_3, %c0_4] : memref<1x256xf32, #tpu.memory_space<vmem>>, vector<1x256xf32>
    %4 = vector.broadcast %3 : vector<1x256xf32> to vector<64x256xf32>
    %5 = arith.addf %2, %4 : vector<64x256xf32>
    %c0_5 = arith.constant 0 : index
    %c0_6 = arith.constant 0 : index
    %6 = vector.load %arg2[%c0_5, %c0_6] : memref<256x256xf32, #tpu.memory_space<vmem>>, vector<256x256xf32>
    %cst_7 = arith.constant 0.000000e+00 : f32
    %7 = vector.broadcast %cst_7 : f32 to vector<8x256xf32>
    %8 = vector.extract_strided_slice %5 {offsets = [0, 0], sizes = [8, 256], strides = [1, 1]} : vector<64x256xf32> to vector<8x256xf32>
    %cst_8 = arith.constant dense<0.000000e+00> : vector<8x256xf32>
    %9 = tpu.matmul %7, %6, %cst_8 {dimension_numbers = #tpu.dot_dimension_numbers<[1], [0], [0], [1], [0, 0, 1, 1], [], []>} : vector<8x256xf32>, vector<256x256xf32>, vector<8x256xf32> -> vector<8x256xf32>
    %10 = arith.addf %9, %8 : vector<8x256xf32>
    %11 = math.tanh %10 : vector<8x256xf32>
    %12 = vector.extract_strided_slice %5 {offsets = [8, 0], sizes = [8, 256], strides = [1, 1]} : vector<64x256xf32> to vector<8x256xf32>
    %cst_9 = arith.constant dense<0.000000e+00> : vector<8x256xf32>
    %13 = tpu.matmul %11, %6, %cst_9 {dimension_numbers = #tpu.dot_dimension_numbers<[1], [0], [0], [1], [0, 0, 1, 1], [], []>} : vector<8x256xf32>, vector<256x256xf32>, vector<8x256xf32> -> vector<8x256xf32>
    %14 = arith.addf %13, %12 : vector<8x256xf32>
    %15 = math.tanh %14 : vector<8x256xf32>
    %16 = vector.extract_strided_slice %5 {offsets = [16, 0], sizes = [8, 256], strides = [1, 1]} : vector<64x256xf32> to vector<8x256xf32>
    %cst_10 = arith.constant dense<0.000000e+00> : vector<8x256xf32>
    %17 = tpu.matmul %15, %6, %cst_10 {dimension_numbers = #tpu.dot_dimension_numbers<[1], [0], [0], [1], [0, 0, 1, 1], [], []>} : vector<8x256xf32>, vector<256x256xf32>, vector<8x256xf32> -> vector<8x256xf32>
    %18 = arith.addf %17, %16 : vector<8x256xf32>
    %19 = math.tanh %18 : vector<8x256xf32>
    %20 = vector.extract_strided_slice %5 {offsets = [24, 0], sizes = [8, 256], strides = [1, 1]} : vector<64x256xf32> to vector<8x256xf32>
    %cst_11 = arith.constant dense<0.000000e+00> : vector<8x256xf32>
    %21 = tpu.matmul %19, %6, %cst_11 {dimension_numbers = #tpu.dot_dimension_numbers<[1], [0], [0], [1], [0, 0, 1, 1], [], []>} : vector<8x256xf32>, vector<256x256xf32>, vector<8x256xf32> -> vector<8x256xf32>
    %22 = arith.addf %21, %20 : vector<8x256xf32>
    %23 = math.tanh %22 : vector<8x256xf32>
    %24 = vector.extract_strided_slice %5 {offsets = [32, 0], sizes = [8, 256], strides = [1, 1]} : vector<64x256xf32> to vector<8x256xf32>
    %cst_12 = arith.constant dense<0.000000e+00> : vector<8x256xf32>
    %25 = tpu.matmul %23, %6, %cst_12 {dimension_numbers = #tpu.dot_dimension_numbers<[1], [0], [0], [1], [0, 0, 1, 1], [], []>} : vector<8x256xf32>, vector<256x256xf32>, vector<8x256xf32> -> vector<8x256xf32>
    %26 = arith.addf %25, %24 : vector<8x256xf32>
    %27 = math.tanh %26 : vector<8x256xf32>
    %28 = vector.extract_strided_slice %5 {offsets = [40, 0], sizes = [8, 256], strides = [1, 1]} : vector<64x256xf32> to vector<8x256xf32>
    %cst_13 = arith.constant dense<0.000000e+00> : vector<8x256xf32>
    %29 = tpu.matmul %27, %6, %cst_13 {dimension_numbers = #tpu.dot_dimension_numbers<[1], [0], [0], [1], [0, 0, 1, 1], [], []>} : vector<8x256xf32>, vector<256x256xf32>, vector<8x256xf32> -> vector<8x256xf32>
    %30 = arith.addf %29, %28 : vector<8x256xf32>
    %31 = math.tanh %30 : vector<8x256xf32>
    %32 = vector.extract_strided_slice %5 {offsets = [48, 0], sizes = [8, 256], strides = [1, 1]} : vector<64x256xf32> to vector<8x256xf32>
    %cst_14 = arith.constant dense<0.000000e+00> : vector<8x256xf32>
    %33 = tpu.matmul %31, %6, %cst_14 {dimension_numbers = #tpu.dot_dimension_numbers<[1], [0], [0], [1], [0, 0, 1, 1], [], []>} : vector<8x256xf32>, vector<256x256xf32>, vector<8x256xf32> -> vector<8x256xf32>
    %34 = arith.addf %33, %32 : vector<8x256xf32>
    %35 = math.tanh %34 : vector<8x256xf32>
    %36 = vector.extract_strided_slice %5 {offsets = [56, 0], sizes = [8, 256], strides = [1, 1]} : vector<64x256xf32> to vector<8x256xf32>
    %cst_15 = arith.constant dense<0.000000e+00> : vector<8x256xf32>
    %37 = tpu.matmul %35, %6, %cst_15 {dimension_numbers = #tpu.dot_dimension_numbers<[1], [0], [0], [1], [0, 0, 1, 1], [], []>} : vector<8x256xf32>, vector<256x256xf32>, vector<8x256xf32> -> vector<8x256xf32>
    %38 = arith.addf %37, %36 : vector<8x256xf32>
    %39 = math.tanh %38 : vector<8x256xf32>
    %c0_16 = arith.constant 0 : index
    %c0_17 = arith.constant 0 : index
    %40 = vector.load %arg4[%c0_16, %c0_17] : memref<256x36xf32, #tpu.memory_space<vmem>>, vector<256x36xf32>
    %cst_18 = arith.constant dense<0.000000e+00> : vector<8x36xf32>
    %41 = tpu.matmul %39, %40, %cst_18 {dimension_numbers = #tpu.dot_dimension_numbers<[1], [0], [0], [1], [0, 0, 1, 1], [], []>} : vector<8x256xf32>, vector<256x36xf32>, vector<8x36xf32> -> vector<8x36xf32>
    %c0_19 = arith.constant 0 : index
    %c0_20 = arith.constant 0 : index
    %42 = vector.load %arg5[%c0_19, %c0_20] : memref<1x36xf32, #tpu.memory_space<vmem>>, vector<1x36xf32>
    %43 = vector.broadcast %42 : vector<1x36xf32> to vector<8x36xf32>
    %44 = arith.addf %41, %43 : vector<8x36xf32>
    %45 = arith.negf %44 : vector<8x36xf32>
    %46 = math.exp %45 : vector<8x36xf32>
    %cst_21 = arith.constant 1.000000e+00 : f32
    %47 = vector.broadcast %cst_21 : f32 to vector<8x36xf32>
    %48 = arith.addf %47, %46 : vector<8x36xf32>
    %49 = arith.divf %47, %48 : vector<8x36xf32>
    %c0_22 = arith.constant 0 : index
    %c0_23 = arith.constant 0 : index
    %50 = vector.load %arg6[%c0_22, %c0_23] : memref<8x36xf32, #tpu.memory_space<vmem>>, vector<8x36xf32>
    tpu.vector_store %arg6[%c0_22, %c0_23], %49 {strides = array<i32>} : memref<8x36xf32, #tpu.memory_space<vmem>>, vector<8x36xf32>,
    return
  }
}

</mosaic_0001>

<bundles_post_ra>
// kernel: rnn_forward.1
= control target key start
LH: loop header
LB: loop body
LE: loop exit
PB: predicated region body
PF: predicated region fallthrough
CT: control target
= control target key end

     0   :  { %v1634_v3 = vmov 0.0   ;;  %vm78_vm0 = vcmask 1043456   ;;  %vm53_vm1 = vcmask 293888   ;;  %s2382_s2 = inlined_call_operand.vmem [shape: f32[256,256], index: 2, kind: input, shape index: {}]   ;;  %s2383_s1 = inlined_call_operand.vmem [shape: f32[36,256], index: 1, kind: input, shape index: {}]   ;;  %s2384_s0 = inlined_call_operand.vmem [shape: f32[64,36], index: 0, kind: input, shape index: {}]   ;;  %s2385_s3 = inlined_call_operand.vmem [shape: f32[1,256], index: 3, kind: input, shape index: {}]   ;;  %s2386_s4 = inlined_call_operand.vmem [shape: f32[256,36], index: 4, kind: input, shape index: {}]   ;;  %s2387_s5 = inlined_call_operand.vmem [shape: f32[1,36], index: 5, kind: input, shape index: {}]   ;;  %s2388_s6 = inlined_call_operand.vmem [shape: f32[8,36], index: 6, kind: output, shape index: {}]  }
   0x1   :  { %v199_v0 = vld [vmem:[%s2382_s2 + $0x8] sm:$0xff]  ;;  %v201_v1 = vld [vmem:[%s2382_s2 + $0x18] sm:$0xff]  ;;  %v198_v2 = vld [vmem:[%s2382_s2] sm:$0xff]  ;;  %149 = vmatprep.mubr.f32.mxu0 %v1634_v3  ;;  %326 = vmatprep.mubr.f32.mxu1 %v1634_v3 }
   0x2   :  { %v1681_v4 = vpack.c.bf16 %v201_v1, %v199_v0  ;;  %v200_v5 = vld [vmem:[%s2382_s2 + $0x10] sm:$0xff]  ;;  %v203_v6 = vld [vmem:[%s2382_s2 + $0x28] sm:$0xff]  ;;  %v205_v7 = vld [vmem:[%s2382_s2 + $0x38] sm:$0xff] }
   0x3   :  { %v1692_v8 = vpack.c.bf16 %v200_v5, %v198_v2  ;;  %v1694_v9 = vpack.c.bf16 %v205_v7, %v203_v6  ;;  %v202_v10 = vld [vmem:[%s2382_s2 + $0x20] sm:$0xff]  ;;  %v204_v11 = vld [vmem:[%s2382_s2 + $0x30] sm:$0xff]  ;;  %v207_v12 = vld [vmem:[%s2382_s2 + $0x48] sm:$0xff] }
   0x4   :  { %1022 = vmatprep.subr.bf16.mxu1 %v1681_v4  ;;  %v209_v13 = vld [vmem:[%s2382_s2 + $0x58] sm:$0xff]  ;;  %v1710_v14 = vpack.c.bf16 %v204_v11, %v202_v10  ;;  %v206_v16 = vld [vmem:[%s2382_s2 + $0x40] sm:$0xff]  ;;  %v208_v17 = vld [vmem:[%s2382_s2 + $0x50] sm:$0xff] }
   0x5   :  { %1024 = vmatpush1.bf16.msra.mxu1 %v1692_v8  ;;  %v1713_v15 = vpack.c.bf16 %v209_v13, %v207_v12  ;;  %v211_v18 = vld [vmem:[%s2382_s2 + $0x68] sm:$0xff]  ;;  %v213_v19 = vld [vmem:[%s2382_s2 + $0x78] sm:$0xff]  ;;  %v1728_v20 = vpack.c.bf16 %v208_v17, %v206_v16  ;;  %v210_v22 = vld [vmem:[%s2382_s2 + $0x60] sm:$0xff] }
   0x6   :  { %1026 = vmatprep.subr.bf16.mxu1 %v1694_v9  ;;  %v1731_v21 = vpack.c.bf16 %v213_v19, %v211_v18  ;;  %v212_v23 = vld [vmem:[%s2382_s2 + $0x70] sm:$0xff]  ;;  %v215_v24 = vld [vmem:[%s2382_s2 + $0x88] sm:$0xff]  ;;  %v217_v25 = vld [vmem:[%s2382_s2 + $0x98] sm:$0xff] }
   0x7   :  { %v1746_v26 = vpack.c.bf16 %v212_v23, %v210_v22  ;;  %v1749_v27 = vpack.c.bf16 %v217_v25, %v215_v24  ;;  %v214_v28 = vld [vmem:[%s2382_s2 + $0x80] sm:$0xff]  ;;  %v216_v29 = vld [vmem:[%s2382_s2 + $0x90] sm:$0xff]  ;;  %v219_v30 = vld [vmem:[%s2382_s2 + $0xa8] sm:$0xff] }
   0x8   :  { %v221_v31 = vld [vmem:[%s2382_s2 + $0xb8] sm:$0xff]  ;;  %v1764_v32 = vpack.c.bf16 %v216_v29, %v214_v28  ;;  %v218_v33 = vld [vmem:[%s2382_s2 + $0xa0] sm:$0xff]  ;;  %v220_v34 = vld [vmem:[%s2382_s2 + $0xb0] sm:$0xff] }
   0x9   :  { %1028 = vmatpush1.bf16.msra.mxu1 %v1710_v14  ;;  %v1773_v35 = vpack.c.bf16 %v221_v31, %v219_v30  ;;  %v223_v36 = vld [vmem:[%s2382_s2 + $0xc8] sm:$0xff]  ;;  %v34_v38 = vld [vmem:[%s2383_s1 + $0x18] sm:$0xff]  ;;  %v31_v41 = vld [vmem:[%s2383_s1] sm:$0xff]  ;;  %v1794_v44 = vpack.c.bf16 %v220_v34, %v218_v33 }
   0xa   :  { %1030 = vmatprep.subr.bf16.mxu1 %v1713_v15  ;;  %v32_v37 = vld [vmem:[%s2383_s1 + $0x8] sm:$0xff]  ;;  %v225_v39 = vld [vmem:[%s2382_s2 + $0xd8] sm:$0xff]  ;;  %v33_v42 = vld [vmem:[%s2383_s1 + $0x10] sm:$0xff] }
   0xb   :  { %v1013_v40 = vpack.c.bf16 %v34_v38, %v32_v37  ;;  %v1015_v43 = vpack.c.bf16 %v33_v42, %v31_v41  ;;  %v36_v45 = vld [vmem:[%s2383_s1 + $0x28] sm:$0xff]  ;;  %v38_v46 = vld [vmem:[%s2383_s1 + $0x38] sm:$0xff]  ;;  %v35_v47 = vld [vmem:[%s2383_s1 + $0x20] sm:$0xff]  ;;  %v1806_v48 = vpack.c.bf16 %v225_v39, %v223_v36 }
   0xc   :  { %v222_v49 = vld [vmem:[%s2382_s2 + $0xc0] sm:$0xff]  ;;  %v224_v50 = vld [vmem:[%s2382_s2 + $0xd0] sm:$0xff]  ;;  %v1017_v51 = vpack.c.bf16 %v38_v46, %v36_v45  ;;  %v227_v53 = vld [vmem:[%s2382_s2 + $0xe8] sm:$0xff] }
   0xd   :  { %1032 = vmatpush1.bf16.msra.mxu1 %v1728_v20  ;;  %1014 = vmatprep.subr.bf16.mxu0 %v1013_v40  ;;  %v37_v52 = vld [vmem:[%s2383_s1 + $0x30] sm:$0xff]  ;;  %v229_v54 = vld [vmem:[%s2382_s2 + $0xf8] sm:$0xff]  ;;  %v40_v56 = vld [vmem:[%s2383_s1 + $0x48] sm:$0xf]  ;;  %v1827_v57 = vpack.c.bf16 %v224_v50, %v222_v49 }
   0xe   :  { %1034 = vmatprep.subr.bf16.mxu1 %v1731_v21  ;;  %1016 = vmatpush1.bf16.msra.mxu0 %v1015_v43  ;;  %v1019_v55 = vpack.c.bf16 %v37_v52, %v35_v47  ;;  %v1830_v58 = vpack.c.bf16 %v229_v54, %v227_v53  ;;  %v226_v59 = vld [vmem:[%s2382_s2 + $0xe0] sm:$0xff]  ;;  %v228_v60 = vld [vmem:[%s2382_s2 + $0xf0] sm:$0xff]  ;;  %v231_v61 = vld [vmem:[%s2382_s2 + $0x108] sm:$0xff] }
   0xf   :  { %1018 = vmatprep.subr.bf16.mxu0 %v1017_v51  ;;  %v233_v62 = vld [vmem:[%s2382_s2 + $0x118] sm:$0xff]  ;;  %v39_v63 = vld [vmem:[%s2383_s1 + $0x40] sm:$0xf]  ;;  %v1852_v1 = vpack.c.bf16 %v228_v60, %v226_v59  ;;  %v232_v6 = vld [vmem:[%s2382_s2 + $0x110] sm:$0xff] }
  0x10   :  { %v23_v0 = vld [vmem:[%s2384_s0] sm:$0xff]  ;;  %v1855_v2 = vpack.c.bf16 %v233_v62, %v231_v61  ;;  %v235_v7 = vld [vmem:[%s2382_s2 + $0x128] sm:$0xff]  ;;  %v237_v10 = vld [vmem:[%s2382_s2 + $0x138] sm:$0xff] }
  0x11   :  { %1036 = vmatpush1.bf16.msra.mxu1 %v1746_v26  ;;  %v230_v5 = vld [vmem:[%s2382_s2 + $0x100] sm:$0xff]  ;;  %v1879_v12 = vpack.c.bf16 %v237_v10, %v235_v7  ;;  %v236_v16 = vld [vmem:[%s2382_s2 + $0x130] sm:$0xff]  ;;  %v239_v17 = vld [vmem:[%s2382_s2 + $0x148] sm:$0xff]  ;;  %v43_v7 = vlaneseq }
  0x12   :  { %1038 = vmatprep.subr.bf16.mxu1 %v1749_v27  ;;  %1020 = vmatpush1.bf16.msra.mxu0 %v1019_v55  ;;  %v1875_v11 = vpack.c.bf16 %v232_v6, %v230_v5  ;;  %v234_v13 = vld [vmem:[%s2382_s2 + $0x120] sm:$0xff]  ;;  %v241_v18 = vld [vmem:[%s2382_s2 + $0x158] sm:$0xff]  ;;  %v240_v24 = vld [vmem:[%s2382_s2 + $0x150] sm:$0xff] }
  0x13   :  { %966 = vmatprep.subr.msk.mxu0 %vm78_vm0, %v40_v56  ;;  %v1895_v19 = vpack.c.bf16 %v236_v16, %v234_v13  ;;  %v1899_v22 = vpack.c.bf16 %v241_v18, %v239_v17  ;;  %v238_v23 = vld [vmem:[%s2382_s2 + $0x140] sm:$0xff]  ;;  %v243_v25 = vld [vmem:[%s2382_s2 + $0x168] sm:$0xff]  ;;  %v245_v28 = vld [vmem:[%s2382_s2 + $0x178] sm:$0xff]  ;;  %v44_v10 = vshrl.u32 %v43_v7, 7 }
  0x14   :  { %v1915_v29 = vpack.c.bf16 %v240_v24, %v238_v23  ;;  %v1919_v30 = vpack.c.bf16 %v245_v28, %v243_v25  ;;  %v242_v31 = vld [vmem:[%s2382_s2 + $0x160] sm:$0xff]  ;;  %v244_v33 = vld [vmem:[%s2382_s2 + $0x170] sm:$0xff]  ;;  %v247_v34 = vld [vmem:[%s2382_s2 + $0x188] sm:$0xff] }
  0x15   :  { %1040 = vmatpush1.bf16.msra.mxu1 %v1764_v32  ;;  %v249_v36 = vld [vmem:[%s2382_s2 + $0x198] sm:$0xff]  ;;  %v1935_v37 = vpack.c.bf16 %v244_v33, %v242_v31  ;;  %v246_v39 = vld [vmem:[%s2382_s2 + $0x180] sm:$0xff]  ;;  %v248_v40 = vld [vmem:[%s2382_s2 + $0x190] sm:$0xff]  ;;  %v45_v13 = vsub.s32 0, %v44_v10  ;;  %v49_v17 = vsub.s32 1, %v44_v10 }
  0x16   :  { %1042 = vmatprep.subr.bf16.mxu1 %v1773_v35  ;;  %967 = vmatpush1.msk.msra.mxu0 %vm78_vm0, %v39_v63  ;;  %v1939_v38 = vpack.c.bf16 %v249_v36, %v247_v34  ;;  %v251_v41 = vld [vmem:[%s2382_s2 + $0x1a8] sm:$0xff]  ;;  %v253_v42 = vld [vmem:[%s2382_s2 + $0x1b8] sm:$0xff]  ;;  %v1955_v43 = vpack.c.bf16 %v248_v40, %v246_v39  ;;  %v250_v46 = vld [vmem:[%s2382_s2 + $0x1a0] sm:$0xff] }
  0x17   :  { %968 = vmatmul.mubr.msk.f32.vlgmr.msra.gmra.mrb[0].mxu0 %vm53_vm1, %v23_v0  ;;  %1278 = vmatprep.subr.bf16.mxu0 %v1681_v4  ;;  %v1959_v45 = vpack.c.bf16 %v253_v42, %v251_v41  ;;  %v252_v47 = vld [vmem:[%s2382_s2 + $0x1b0] sm:$0xff]  ;;  %v255_v49 = vld [vmem:[%s2382_s2 + $0x1c8] sm:$0xff]  ;;  %v257_v50 = vld [vmem:[%s2382_s2 + $0x1d8] sm:$0xff] }
  0x18   :  { %155 = vmatprep.mubr.f32.mxu0 %v1634_v3  ;;  %1280 = vmatpush1.bf16.msra.mxu0 %v1692_v8  ;;  %v1975_v51 = vpack.c.bf16 %v252_v47, %v250_v46  ;;  %v1979_v52 = vpack.c.bf16 %v257_v50, %v255_v49  ;;  %v254_v53 = vld [vmem:[%s2382_s2 + $0x1c0] sm:$0xff]  ;;  %v256_v54 = vld [vmem:[%s2382_s2 + $0x1d0] sm:$0xff]  ;;  %v259_v55 = vld [vmem:[%s2382_s2 + $0x1e8] sm:$0xff] }
  0x19   :  { %1044 = vmatpush1.bf16.msra.mxu1 %v1794_v44  ;;  %1282 = vmatprep.subr.bf16.mxu0 %v1694_v9  ;;  %v261_v56 = vld [vmem:[%s2382_s2 + $0x1f8] sm:$0xff]  ;;  %v1995_v59 = vpack.c.bf16 %v256_v54, %v254_v53  ;;  %v258_v61 = vld [vmem:[%s2382_s2 + $0x1e0] sm:$0xff]  ;;  %v260_v62 = vld [vmem:[%s2382_s2 + $0x1f0] sm:$0xff] }
  0x1a   :  { %1046 = vmatprep.subr.bf16.mxu1 %v1806_v48  ;;  %v1999_v60 = vpack.c.bf16 %v261_v56, %v259_v55  ;;  %v2009_v63 = vpack.c.bf16 %v260_v62, %v258_v61  ;;  %v24_v0 = vld [vmem:[%s2384_s0 + $0x8] sm:$0xff]  ;;  %v41_v16 = vld [vmem:[%s2385_s3] sm:$0x3]  ;;  %v25_v42 = vld [vmem:[%s2384_s0 + $0x10] sm:$0xff] }
  0x1b   :  { %969 = vmatmul.mubr.msk.f32.gmra.mrb[2].mxu0 %vm53_vm1, %v24_v0  ;;  %v2072_v18 = vrot.slane %v41_v16, %v45_v13  ;;  %v2074_v23 = vrot.slane %v41_v16, %v49_v17  ;;  %v26_v0 = vld [vmem:[%s2384_s0 + $0x18] sm:$0xff] }
  0x1c   :  { %1284 = vmatpush1.bf16.msra.mxu0 %v1710_v14  ;;  %161 = vmatprep.mubr.f32.mxu0 %v1634_v3 }
  0x1d   :  { %1048 = vmatpush1.bf16.msra.mxu1 %v1827_v57  ;;  %1286 = vmatprep.subr.bf16.mxu0 %v1713_v15 }
  0x1e   :  { %1050 = vmatprep.subr.bf16.mxu1 %v1830_v58 }
  0x1f   :  { %970 = vmatmul.mubr.msk.f32.gmra.mrb[4].mxu0 %vm53_vm1, %v25_v42 }
  0x20   :  { %1288 = vmatpush1.bf16.msra.mxu0 %v1728_v20  ;;  %167 = vmatprep.mubr.f32.mxu0 %v1634_v3 }
  0x21   :  { %1052 = vmatpush1.bf16.msra.mxu1 %v1852_v1  ;;  %1290 = vmatprep.subr.bf16.mxu0 %v1731_v21 }
  0x22   :  { %1054 = vmatprep.subr.bf16.mxu1 %v1855_v2 }
  0x23   :  { %971 = vmatmul.mubr.msk.f32.gmra.mrb[6].mxu0 %vm53_vm1, %v26_v0 }
  0x24   :  { %1292 = vmatpush1.bf16.msra.mxu0 %v1746_v26  ;;  %173 = vmatprep.mubr.f32.mxu0 %v1634_v3 }
  0x25   :  { %1056 = vmatpush1.bf16.msra.mxu1 %v1875_v11  ;;  %1294 = vmatprep.subr.bf16.mxu0 %v1749_v27 }
  0x26   :  { %1058 = vmatprep.subr.bf16.mxu1 %v1879_v12 }
  0x28   :  { %1296 = vmatpush1.bf16.msra.mxu0 %v1764_v32 }
  0x29   :  { %1060 = vmatpush1.bf16.msra.mxu1 %v1895_v19  ;;  %1298 = vmatprep.subr.bf16.mxu0 %v1773_v35 }
  0x2a   :  { %1062 = vmatprep.subr.bf16.mxu1 %v1899_v22 }
  0x2c   :  { %1300 = vmatpush1.bf16.msra.mxu0 %v1794_v44 }
  0x2d   :  { %1064 = vmatpush1.bf16.msra.mxu1 %v1915_v29  ;;  %1302 = vmatprep.subr.bf16.mxu0 %v1806_v48 }
  0x2e   :  { %1066 = vmatprep.subr.bf16.mxu1 %v1919_v30 }
  0x30   :  { %1304 = vmatpush1.bf16.msra.mxu0 %v1827_v57 }
  0x31   :  { %1068 = vmatpush1.bf16.msra.mxu1 %v1935_v37  ;;  %1306 = vmatprep.subr.bf16.mxu0 %v1830_v58 }
  0x32   :  { %1070 = vmatprep.subr.bf16.mxu1 %v1939_v38 }
  0x34   :  { %1308 = vmatpush1.bf16.msra.mxu0 %v1852_v1 }
  0x35   :  { %1072 = vmatpush1.bf16.msra.mxu1 %v1955_v43  ;;  %1310 = vmatprep.subr.bf16.mxu0 %v1855_v2 }
  0x36   :  { %1074 = vmatprep.subr.bf16.mxu1 %v1959_v45 }
  0x38   :  { %1312 = vmatpush1.bf16.msra.mxu0 %v1875_v11 }
  0x39   :  { %1076 = vmatpush1.bf16.msra.mxu1 %v1975_v51  ;;  %1314 = vmatprep.subr.bf16.mxu0 %v1879_v12 }
  0x3a   :  { %1078 = vmatprep.subr.bf16.mxu1 %v1979_v52 }
  0x3c   :  { %1316 = vmatpush1.bf16.msra.mxu0 %v1895_v19 }
  0x3d   :  { %1080 = vmatpush1.bf16.msra.mxu1 %v1995_v59  ;;  %1318 = vmatprep.subr.bf16.mxu0 %v1899_v22 }
  0x3e   :  { %1082 = vmatprep.subr.bf16.mxu1 %v1999_v60 }
  0x40   :  { %1320 = vmatpush1.bf16.msra.mxu0 %v1915_v29 }
  0x41   :  { %1084 = vmatpush1.bf16.msra.mxu1 %v2009_v63  ;;  %1322 = vmatprep.subr.bf16.mxu0 %v1919_v30 }
  0x42   :  { %1086 = vmatprep.subr.bf16.mxu1 %v1681_v4 }
  0x44   :  { %327 = vmatmul.mubr.f32.vlgmr.msra.gmra.mrb[0].mxu1 %v1634_v3  ;;  %1324 = vmatpush1.bf16.msra.mxu0 %v1935_v37 }
  0x45   :  { %1088 = vmatpush1.bf16.msra.mxu1 %v1692_v8  ;;  %1326 = vmatprep.subr.bf16.mxu0 %v1939_v38 }
  0x46   :  { %1090 = vmatprep.subr.bf16.mxu1 %v1694_v9 }
  0x48   :  { %1328 = vmatpush1.bf16.msra.mxu0 %v1955_v43 }
  0x49   :  { %1092 = vmatpush1.bf16.msra.mxu1 %v1710_v14  ;;  %1330 = vmatprep.subr.bf16.mxu0 %v1959_v45 }
  0x4a   :  { %1094 = vmatprep.subr.bf16.mxu1 %v1713_v15 }
  0x4c   :  { %1332 = vmatpush1.bf16.msra.mxu0 %v1975_v51 }
  0x4d   :  { %1096 = vmatpush1.bf16.msra.mxu1 %v1728_v20  ;;  %1334 = vmatprep.subr.bf16.mxu0 %v1979_v52 }
  0x4e   :  { %1098 = vmatprep.subr.bf16.mxu1 %v1731_v21 }
  0x50   :  { %1336 = vmatpush1.bf16.msra.mxu0 %v1995_v59 }
  0x51   :  { %1100 = vmatpush1.bf16.msra.mxu1 %v1746_v26  ;;  %1338 = vmatprep.subr.bf16.mxu0 %v1999_v60 }
  0x52   :  { %1102 = vmatprep.subr.bf16.mxu1 %v1749_v27 }
  0x54   :  { %1340 = vmatpush1.bf16.msra.mxu0 %v2009_v63 }
  0x55   :  { %1104 = vmatpush1.bf16.msra.mxu1 %v1764_v32  ;;  %1342 = vmatprep.subr.bf16.mxu0 %v1681_v4 }
  0x56   :  { %1106 = vmatprep.subr.bf16.mxu1 %v1773_v35 }
  0x59   :  { %1108 = vmatpush1.bf16.msra.mxu1 %v1794_v44 }
  0x5a   :  { %1110 = vmatprep.subr.bf16.mxu1 %v1806_v48 }
  0x5d   :  { %1112 = vmatpush1.bf16.msra.mxu1 %v1827_v57 }
  0x5e   :  { %1114 = vmatprep.subr.bf16.mxu1 %v1830_v58 }
  0x61   :  { %1116 = vmatpush1.bf16.msra.mxu1 %v1852_v1 }
  0x62   :  { %1118 = vmatprep.subr.bf16.mxu1 %v1855_v2 }
  0x65   :  { %1120 = vmatpush1.bf16.msra.mxu1 %v1875_v11 }
  0x66   :  { %1122 = vmatprep.subr.bf16.mxu1 %v1879_v12 }
  0x69   :  { %1124 = vmatpush1.bf16.msra.mxu1 %v1895_v19 }
  0x6a   :  { %1126 = vmatprep.subr.bf16.mxu1 %v1899_v22 }
  0x6d   :  { %1128 = vmatpush1.bf16.msra.mxu1 %v1915_v29 }
  0x6e   :  { %1130 = vmatprep.subr.bf16.mxu1 %v1919_v30 }
  0x71   :  { %1132 = vmatpush1.bf16.msra.mxu1 %v1935_v37 }
  0x72   :  { %1134 = vmatprep.subr.bf16.mxu1 %v1939_v38 }
  0x75   :  { %1136 = vmatpush1.bf16.msra.mxu1 %v1955_v43 }
  0x76   :  { %1138 = vmatprep.subr.bf16.mxu1 %v1959_v45 }
  0x79   :  { %1140 = vmatpush1.bf16.msra.mxu1 %v1975_v51 }
  0x7a   :  { %1142 = vmatprep.subr.bf16.mxu1 %v1979_v52 }
  0x7d   :  { %1144 = vmatpush1.bf16.msra.mxu1 %v1995_v59 }
  0x7e   :  { %1146 = vmatprep.subr.bf16.mxu1 %v1999_v60 }
  0x81   :  { %1148 = vmatpush1.bf16.msra.mxu1 %v2009_v63 }
  0x82   :  { %1150 = vmatprep.subr.bf16.mxu1 %v1681_v4 }
  0xea   :  { %v151_v5 = vpop.f32.mrb[0].mxu0 }
  0xeb   :  { %v153_v6 = vpop.f32.mrb[1].mxu0  ;;  %v152_v24 = vadd.f32 %v151_v5, %v2072_v18  ;;  %v27_v5 = vld [vmem:[%s2384_s0 + $0x20] sm:$0xff] }
  0xec   :  { %v154_v25 = vadd.f32 %v153_v6, %v2074_v23  ;;  %972 = vmatmul.mubr.msk.f32.gmra.mrb[8].mxu0 %vm53_vm1, %v27_v5 }
  0xed   :  { %179 = vmatprep.mubr.f32.mxu0 %v1634_v3 }
  0xee   :  { %v157_v40 = vpop.f32.mrb[2].mxu0 }
  0xef   :  { %v159_v41 = vpop.f32.mrb[3].mxu0  ;;  %v158_v46 = vadd.f32 %v157_v40, %v2072_v18 }
  0xf0   :  { %v160_v47 = vadd.f32 %v159_v41, %v2074_v23 }
  0xf2   :  { %v163_v61 = vpop.f32.mrb[4].mxu0 }
  0xf3   :  { %v165_v62 = vpop.f32.mrb[5].mxu0  ;;  %v164_v6 = vadd.f32 %v163_v61, %v2072_v18 }
  0xf4   :  { %v166_v7 = vadd.f32 %v165_v62, %v2074_v23 }
 0x117   :  { %v328_v28 = vpop.f32.mrb[0].mxu1 }
 0x118   :  { %v329_v31 = vadd.f32 %v328_v28, %v152_v24  ;;  %v330_v33 = vpop.f32.mrb[1].mxu1  ;;  %v169_v28 = vpop.f32.mrb[6].mxu0 }
 0x119   :  { %v331_v34 = vadd.f32 %v330_v33, %v154_v25  ;;  %v28_v33 = vld [vmem:[%s2384_s0 + $0x28] sm:$0xff] }
 0x11a   :  { %973 = vmatmul.mubr.msk.f32.gmra.mrb[10].mxu0 %vm53_vm1, %v28_v33  ;;  %v856_v33 = vld [vmem:[%s2386_s4 + $0x50] sm:$0xff] }
 0x11b   :  { %1598 = vtanh.f32 %v331_v34  ;;  %185 = vmatprep.mubr.f32.mxu0 %v1634_v3  ;;  %v29_v34 = vld [vmem:[%s2384_s0 + $0x30] sm:$0xff] }
 0x11c   :  { %1600 = vtanh.f32 %v329_v31  ;;  %v171_v31 = vpop.f32.mrb[7].mxu0 }
 0x11d   :  { %v172_v40 = vadd.f32 %v171_v31, %v2074_v23 }
 0x11e   :  { %974 = vmatmul.mubr.msk.f32.gmra.mrb[12].mxu0 %vm53_vm1, %v29_v34  ;;  %v857_v34 = vld [vmem:[%s2386_s4 + $0x58] sm:$0xff] }
 0x11f   :  { %191 = vmatprep.mubr.f32.mxu0 %v1634_v3 }
 0x125   :  { %v1599_v36 = vpop.eup %1598 }
 0x126   :  { %v1601_v39 = vpop.eup %1600  ;;  %399 = vmatprep.mubr.f32.mxu1 %v1599_v36  ;;  %v30_v36 = vld [vmem:[%s2384_s0 + $0x38] sm:$0xff] }
 0x127   :  { %400 = vmatmul.mubr.f32.vlgmr.msra.gmra.mrb[2].mxu1 %v1601_v39  ;;  %975 = vmatmul.mubr.msk.f32.gmra.mrb[14].mxu0 %vm53_vm1, %v30_v36  ;;  %v170_v39 = vadd.f32 %v169_v28, %v2072_v18  ;;  %v873_v28 = vld [vmem:[%s2386_s4 + $0xd8] sm:$0xff]  ;;  %v1555_v36 = vpack.c.bf16 %v857_v34, %v856_v33 }
 0x128   :  { %1152 = vmatpush1.bf16.msra.mxu1 %v1692_v8 }
 0x129   :  { %1154 = vmatprep.subr.bf16.mxu1 %v1694_v9 }
 0x12c   :  { %1156 = vmatpush1.bf16.msra.mxu1 %v1710_v14 }
 0x12d   :  { %1158 = vmatprep.subr.bf16.mxu1 %v1713_v15 }
 0x130   :  { %1160 = vmatpush1.bf16.msra.mxu1 %v1728_v20 }
 0x131   :  { %1162 = vmatprep.subr.bf16.mxu1 %v1731_v21 }
 0x134   :  { %1164 = vmatpush1.bf16.msra.mxu1 %v1746_v26 }
 0x135   :  { %1166 = vmatprep.subr.bf16.mxu1 %v1749_v27 }
 0x138   :  { %1168 = vmatpush1.bf16.msra.mxu1 %v1764_v32 }
 0x139   :  { %1170 = vmatprep.subr.bf16.mxu1 %v1773_v35 }
 0x13c   :  { %1172 = vmatpush1.bf16.msra.mxu1 %v1794_v44 }
 0x13d   :  { %1174 = vmatprep.subr.bf16.mxu1 %v1806_v48 }
 0x140   :  { %1176 = vmatpush1.bf16.msra.mxu1 %v1827_v57 }
 0x141   :  { %1178 = vmatprep.subr.bf16.mxu1 %v1830_v58 }
 0x144   :  { %1180 = vmatpush1.bf16.msra.mxu1 %v1852_v1 }
 0x145   :  { %1182 = vmatprep.subr.bf16.mxu1 %v1855_v2 }
 0x148   :  { %1184 = vmatpush1.bf16.msra.mxu1 %v1875_v11 }
 0x149   :  { %1186 = vmatprep.subr.bf16.mxu1 %v1879_v12 }
 0x14c   :  { %1188 = vmatpush1.bf16.msra.mxu1 %v1895_v19 }
 0x14d   :  { %1190 = vmatprep.subr.bf16.mxu1 %v1899_v22 }
 0x150   :  { %1192 = vmatpush1.bf16.msra.mxu1 %v1915_v29 }
 0x151   :  { %1194 = vmatprep.subr.bf16.mxu1 %v1919_v30 }
 0x154   :  { %1196 = vmatpush1.bf16.msra.mxu1 %v1935_v37 }
 0x155   :  { %1198 = vmatprep.subr.bf16.mxu1 %v1939_v38 }
 0x158   :  { %1200 = vmatpush1.bf16.msra.mxu1 %v1955_v43 }
 0x159   :  { %1202 = vmatprep.subr.bf16.mxu1 %v1959_v45 }
 0x15c   :  { %1204 = vmatpush1.bf16.msra.mxu1 %v1975_v51 }
 0x15d   :  { %1206 = vmatprep.subr.bf16.mxu1 %v1979_v52 }
 0x160   :  { %1208 = vmatpush1.bf16.msra.mxu1 %v1995_v59 }
 0x161   :  { %1210 = vmatprep.subr.bf16.mxu1 %v1999_v60 }
 0x164   :  { %1212 = vmatpush1.bf16.msra.mxu1 %v2009_v63 }
 0x165   :  { %1214 = vmatprep.subr.bf16.mxu1 %v1681_v4 }
 0x1fa   :  { %v401_v49 = vpop.f32.mrb[2].mxu1 }
 0x1fb   :  { %v402_v50 = vadd.f32 %v401_v49, %v158_v46  ;;  %v403_v53 = vpop.f32.mrb[3].mxu1 }
 0x1fc   :  { %v404_v54 = vadd.f32 %v403_v53, %v160_v47 }
 0x1fe   :  { %1602 = vtanh.f32 %v404_v54 }
 0x1ff   :  { %1604 = vtanh.f32 %v402_v50 }
 0x208   :  { %v1603_v55 = vpop.eup %1602 }
 0x209   :  { %v1605_v56 = vpop.eup %1604  ;;  %472 = vmatprep.mubr.f32.mxu1 %v1603_v55 }
 0x20a   :  { %473 = vmatmul.mubr.f32.vlgmr.msra.gmra.mrb[4].mxu1 %v1605_v56 }
 0x20b   :  { %1216 = vmatpush1.bf16.msra.mxu1 %v1692_v8 }
 0x20c   :  { %1218 = vmatprep.subr.bf16.mxu1 %v1694_v9 }
 0x20f   :  { %1220 = vmatpush1.bf16.msra.mxu1 %v1710_v14 }
 0x210   :  { %1222 = vmatprep.subr.bf16.mxu1 %v1713_v15 }
 0x213   :  { %1224 = vmatpush1.bf16.msra.mxu1 %v1728_v20 }
 0x214   :  { %1226 = vmatprep.subr.bf16.mxu1 %v1731_v21 }
 0x217   :  { %1228 = vmatpush1.bf16.msra.mxu1 %v1746_v26 }
 0x218   :  { %1230 = vmatprep.subr.bf16.mxu1 %v1749_v27 }
 0x21b   :  { %1232 = vmatpush1.bf16.msra.mxu1 %v1764_v32 }
 0x21c   :  { %1234 = vmatprep.subr.bf16.mxu1 %v1773_v35 }
 0x21f   :  { %1236 = vmatpush1.bf16.msra.mxu1 %v1794_v44 }
 0x220   :  { %1238 = vmatprep.subr.bf16.mxu1 %v1806_v48 }
 0x223   :  { %1240 = vmatpush1.bf16.msra.mxu1 %v1827_v57 }
 0x224   :  { %1242 = vmatprep.subr.bf16.mxu1 %v1830_v58 }
 0x227   :  { %1244 = vmatpush1.bf16.msra.mxu1 %v1852_v1 }
 0x228   :  { %1246 = vmatprep.subr.bf16.mxu1 %v1855_v2 }
 0x22b   :  { %1248 = vmatpush1.bf16.msra.mxu1 %v1875_v11 }
 0x22c   :  { %1250 = vmatprep.subr.bf16.mxu1 %v1879_v12 }
 0x22f   :  { %1252 = vmatpush1.bf16.msra.mxu1 %v1895_v19 }
 0x230   :  { %1254 = vmatprep.subr.bf16.mxu1 %v1899_v22 }
 0x233   :  { %1256 = vmatpush1.bf16.msra.mxu1 %v1915_v29 }
 0x234   :  { %1258 = vmatprep.subr.bf16.mxu1 %v1919_v30 }
 0x237   :  { %1260 = vmatpush1.bf16.msra.mxu1 %v1935_v37 }
 0x238   :  { %1262 = vmatprep.subr.bf16.mxu1 %v1939_v38 }
 0x23b   :  { %1264 = vmatpush1.bf16.msra.mxu1 %v1955_v43 }
 0x23c   :  { %1266 = vmatprep.subr.bf16.mxu1 %v1959_v45 }
 0x23f   :  { %1268 = vmatpush1.bf16.msra.mxu1 %v1975_v51 }
 0x240   :  { %1270 = vmatprep.subr.bf16.mxu1 %v1979_v52 }
 0x243   :  { %1272 = vmatpush1.bf16.msra.mxu1 %v1995_v59 }
 0x244   :  { %1274 = vmatprep.subr.bf16.mxu1 %v1999_v60 }
 0x247   :  { %1276 = vmatpush1.bf16.msra.mxu1 %v2009_v63 }
 0x2dd   :  { %v474_v10 = vpop.f32.mrb[4].mxu1 }
 0x2de   :  { %v475_v13 = vadd.f32 %v474_v10, %v164_v6  ;;  %v476_v16 = vpop.f32.mrb[5].mxu1 }
 0x2df   :  { %v477_v17 = vadd.f32 %v476_v16, %v166_v7  ;;  %v854_v16 = vld [vmem:[%s2386_s4 + $0x40] sm:$0xff] }
 0x2e1   :  { %1606 = vtanh.f32 %v477_v17  ;;  %v855_v17 = vld [vmem:[%s2386_s4 + $0x48] sm:$0xff] }
 0x2e2   :  { %1608 = vtanh.f32 %v475_v13 }
 0x2eb   :  { %v1607_v24 = vpop.eup %1606 }
 0x2ec   :  { %v1609_v25 = vpop.eup %1608  ;;  %545 = vmatprep.mubr.f32.mxu1 %v1607_v24  ;;  %v1551_v24 = vpack.c.bf16 %v855_v17, %v854_v16 }
 0x2ed   :  { %546 = vmatmul.mubr.f32.vlgmr.msra.gmra.mrb[6].mxu1 %v1609_v25  ;;  %v872_v25 = vld [vmem:[%s2386_s4 + $0xd0] sm:$0xff] }
 0x2ee   :  { %v1553_v31 = vpack.c.bf16 %v873_v28, %v872_v25 }
 0x3c0   :  { %v547_v41 = vpop.f32.mrb[6].mxu1 }
 0x3c1   :  { %v548_v42 = vadd.f32 %v547_v41, %v170_v39  ;;  %v549_v46 = vpop.f32.mrb[7].mxu1  ;;  %v874_v39 = vld [vmem:[%s2386_s4 + $0xe0] sm:$0xff] }
 0x3c2   :  { %v550_v47 = vadd.f32 %v549_v46, %v172_v40  ;;  %v875_v40 = vld [vmem:[%s2386_s4 + $0xe8] sm:$0xff]  ;;  %v858_v41 = vld [vmem:[%s2386_s4 + $0x60] sm:$0xff] }
 0x3c3   :  { %v859_v46 = vld [vmem:[%s2386_s4 + $0x68] sm:$0xff] }
 0x3c4   :  { %1610 = vtanh.f32 %v550_v47  ;;  %v876_v47 = vld [vmem:[%s2386_s4 + $0xf0] sm:$0xff] }
 0x3c5   :  { %1612 = vtanh.f32 %v548_v42  ;;  %v1557_v42 = vpack.c.bf16 %v875_v40, %v874_v39 }
 0x3ce   :  { %v1611_v49 = vpop.eup %1610 }
 0x3cf   :  { %v1613_v50 = vpop.eup %1612  ;;  %618 = vmatprep.mubr.f32.mxu0 %v1611_v49  ;;  %v877_v49 = vld [vmem:[%s2386_s4 + $0xf8] sm:$0xff] }
 0x3d0   :  { %619 = vmatmul.mubr.f32.vlgmr.msra.gmra.mrb[8].mxu0 %v1613_v50  ;;  %v1559_v50 = vpack.c.bf16 %v859_v46, %v858_v41 }
 0x3d1   :  { %1344 = vmatpush1.bf16.msra.mxu0 %v1692_v8 }
 0x3d2   :  { %1346 = vmatprep.subr.bf16.mxu0 %v1694_v9 }
 0x3d5   :  { %1348 = vmatpush1.bf16.msra.mxu0 %v1710_v14 }
 0x3d6   :  { %1350 = vmatprep.subr.bf16.mxu0 %v1713_v15 }
 0x3d9   :  { %1352 = vmatpush1.bf16.msra.mxu0 %v1728_v20 }
 0x3da   :  { %1354 = vmatprep.subr.bf16.mxu0 %v1731_v21 }
 0x3dd   :  { %1356 = vmatpush1.bf16.msra.mxu0 %v1746_v26 }
 0x3de   :  { %1358 = vmatprep.subr.bf16.mxu0 %v1749_v27 }
 0x3e1   :  { %1360 = vmatpush1.bf16.msra.mxu0 %v1764_v32 }
 0x3e2   :  { %1362 = vmatprep.subr.bf16.mxu0 %v1773_v35 }
 0x3e5   :  { %1364 = vmatpush1.bf16.msra.mxu0 %v1794_v44 }
 0x3e6   :  { %1366 = vmatprep.subr.bf16.mxu0 %v1806_v48 }
 0x3e9   :  { %1368 = vmatpush1.bf16.msra.mxu0 %v1827_v57 }
 0x3ea   :  { %1370 = vmatprep.subr.bf16.mxu0 %v1830_v58 }
 0x3ed   :  { %1372 = vmatpush1.bf16.msra.mxu0 %v1852_v1 }
 0x3ee   :  { %1374 = vmatprep.subr.bf16.mxu0 %v1855_v2 }
 0x3f1   :  { %1376 = vmatpush1.bf16.msra.mxu0 %v1875_v11 }
 0x3f2   :  { %1378 = vmatprep.subr.bf16.mxu0 %v1879_v12 }
 0x3f5   :  { %1380 = vmatpush1.bf16.msra.mxu0 %v1895_v19 }
 0x3f6   :  { %1382 = vmatprep.subr.bf16.mxu0 %v1899_v22 }
 0x3f9   :  { %1384 = vmatpush1.bf16.msra.mxu0 %v1915_v29 }
 0x3fa   :  { %1386 = vmatprep.subr.bf16.mxu0 %v1919_v30 }
 0x3fd   :  { %1388 = vmatpush1.bf16.msra.mxu0 %v1935_v37 }
 0x3fe   :  { %1390 = vmatprep.subr.bf16.mxu0 %v1939_v38 }
 0x401   :  { %1392 = vmatpush1.bf16.msra.mxu0 %v1955_v43 }
 0x402   :  { %1394 = vmatprep.subr.bf16.mxu0 %v1959_v45 }
 0x405   :  { %1396 = vmatpush1.bf16.msra.mxu0 %v1975_v51 }
 0x406   :  { %1398 = vmatprep.subr.bf16.mxu0 %v1979_v52 }
 0x409   :  { %1400 = vmatpush1.bf16.msra.mxu0 %v1995_v59 }
 0x40a   :  { %1402 = vmatprep.subr.bf16.mxu0 %v1999_v60 }
 0x40d   :  { %1404 = vmatpush1.bf16.msra.mxu0 %v2009_v63 }
 0x40e   :  { %1406 = vmatprep.subr.bf16.mxu0 %v1681_v4 }
 0x4a3   :  { %v620_v3 = vpop.f32.mrb[8].mxu0 }
 0x4a4   :  { %v1581_v53 = vadd.f32 %v620_v3, %v2072_v18  ;;  %v622_v54 = vpop.f32.mrb[9].mxu0  ;;  %v1561_v3 = vpack.c.bf16 %v877_v49, %v876_v47 }
 0x4a5   :  { %v1582_v55 = vadd.f32 %v622_v54, %v2074_v23  ;;  %v861_v54 = vld [vmem:[%s2386_s4 + $0x78] sm:$0xff] }
 0x4a7   :  { %1614 = vtanh.f32 %v1582_v55 }
 0x4a8   :  { %1616 = vtanh.f32 %v1581_v53  ;;  %v860_v53 = vld [vmem:[%s2386_s4 + $0x70] sm:$0xff] }
 0x4a9   :  { %v1563_v55 = vpack.c.bf16 %v861_v54, %v860_v53 }
 0x4b1   :  { %v1615_v56 = vpop.eup %1614 }
 0x4b2   :  { %v1617_v61 = vpop.eup %1616  ;;  %691 = vmatprep.mubr.f32.mxu0 %v1615_v56 }
 0x4b3   :  { %692 = vmatmul.mubr.f32.vlgmr.msra.gmra.mrb[10].mxu0 %v1617_v61 }
 0x4b4   :  { %1408 = vmatpush1.bf16.msra.mxu0 %v1692_v8 }
 0x4b5   :  { %1410 = vmatprep.subr.bf16.mxu0 %v1694_v9 }
 0x4b8   :  { %1412 = vmatpush1.bf16.msra.mxu0 %v1710_v14 }
 0x4b9   :  { %1414 = vmatprep.subr.bf16.mxu0 %v1713_v15 }
 0x4bc   :  { %1416 = vmatpush1.bf16.msra.mxu0 %v1728_v20 }
 0x4bd   :  { %1418 = vmatprep.subr.bf16.mxu0 %v1731_v21 }
 0x4c0   :  { %1420 = vmatpush1.bf16.msra.mxu0 %v1746_v26 }
 0x4c1   :  { %1422 = vmatprep.subr.bf16.mxu0 %v1749_v27 }
 0x4c4   :  { %1424 = vmatpush1.bf16.msra.mxu0 %v1764_v32 }
 0x4c5   :  { %1426 = vmatprep.subr.bf16.mxu0 %v1773_v35 }
 0x4c8   :  { %1428 = vmatpush1.bf16.msra.mxu0 %v1794_v44 }
 0x4c9   :  { %1430 = vmatprep.subr.bf16.mxu0 %v1806_v48 }
 0x4cc   :  { %1432 = vmatpush1.bf16.msra.mxu0 %v1827_v57 }
 0x4cd   :  { %1434 = vmatprep.subr.bf16.mxu0 %v1830_v58 }
 0x4d0   :  { %1436 = vmatpush1.bf16.msra.mxu0 %v1852_v1 }
 0x4d1   :  { %1438 = vmatprep.subr.bf16.mxu0 %v1855_v2 }
 0x4d4   :  { %1440 = vmatpush1.bf16.msra.mxu0 %v1875_v11 }
 0x4d5   :  { %1442 = vmatprep.subr.bf16.mxu0 %v1879_v12 }
 0x4d8   :  { %1444 = vmatpush1.bf16.msra.mxu0 %v1895_v19 }
 0x4d9   :  { %1446 = vmatprep.subr.bf16.mxu0 %v1899_v22 }
 0x4dc   :  { %1448 = vmatpush1.bf16.msra.mxu0 %v1915_v29 }
 0x4dd   :  { %1450 = vmatprep.subr.bf16.mxu0 %v1919_v30 }
 0x4e0   :  { %1452 = vmatpush1.bf16.msra.mxu0 %v1935_v37 }
 0x4e1   :  { %1454 = vmatprep.subr.bf16.mxu0 %v1939_v38 }
 0x4e4   :  { %1456 = vmatpush1.bf16.msra.mxu0 %v1955_v43 }
 0x4e5   :  { %1458 = vmatprep.subr.bf16.mxu0 %v1959_v45 }
 0x4e8   :  { %1460 = vmatpush1.bf16.msra.mxu0 %v1975_v51 }
 0x4e9   :  { %1462 = vmatprep.subr.bf16.mxu0 %v1979_v52 }
 0x4ec   :  { %1464 = vmatpush1.bf16.msra.mxu0 %v1995_v59 }
 0x4ed   :  { %1466 = vmatprep.subr.bf16.mxu0 %v1999_v60 }
 0x4f0   :  { %1468 = vmatpush1.bf16.msra.mxu0 %v2009_v63 }
 0x4f1   :  { %1470 = vmatprep.subr.bf16.mxu0 %v1681_v4  ;;  %v862_v4 = vld [vmem:[%s2386_s4 + $0x80] sm:$0xff] }
 0x586   :  { %v693_v62 = vpop.f32.mrb[10].mxu0 }
 0x587   :  { %v1583_v0 = vadd.f32 %v693_v62, %v2072_v18  ;;  %v695_v5 = vpop.f32.mrb[11].mxu0 }
 0x588   :  { %v1584_v6 = vadd.f32 %v695_v5, %v2074_v23 }
 0x58a   :  { %1618 = vtanh.f32 %v1584_v6 }
 0x58b   :  { %1620 = vtanh.f32 %v1583_v0 }
 0x594   :  { %v1619_v7 = vpop.eup %1618 }
 0x595   :  { %v1621_v10 = vpop.eup %1620  ;;  %764 = vmatprep.mubr.f32.mxu0 %v1619_v7 }
 0x596   :  { %765 = vmatmul.mubr.f32.vlgmr.msra.gmra.mrb[12].mxu0 %v1621_v10  ;;  %v976_v10 = vld [vmem:[%s2387_s5] ss:$0 sm:$0xff] }
 0x597   :  { %1472 = vmatpush1.bf16.msra.mxu0 %v1692_v8  ;;  %v863_v8 = vld [vmem:[%s2386_s4 + $0x88] sm:$0xff] }
 0x598   :  { %1474 = vmatprep.subr.bf16.mxu0 %v1694_v9  ;;  %v846_v9 = vld [vmem:[%s2386_s4] sm:$0xff] }
 0x59b   :  { %1476 = vmatpush1.bf16.msra.mxu0 %v1710_v14  ;;  %v1533_v14 = vpack.c.bf16 %v863_v8, %v862_v4 }
 0x59c   :  { %1478 = vmatprep.subr.bf16.mxu0 %v1713_v15  ;;  %v847_v15 = vld [vmem:[%s2386_s4 + $0x8] sm:$0xff] }
 0x59d   :  { %1534 = vmatprep.subr.bf16.mxu1 %v1533_v14 }
 0x59f   :  { %1480 = vmatpush1.bf16.msra.mxu0 %v1728_v20  ;;  %v864_v20 = vld [vmem:[%s2386_s4 + $0x90] sm:$0xff] }
 0x5a0   :  { %1482 = vmatprep.subr.bf16.mxu0 %v1731_v21  ;;  %v865_v21 = vld [vmem:[%s2386_s4 + $0x98] sm:$0xff] }
 0x5a3   :  { %1484 = vmatpush1.bf16.msra.mxu0 %v1746_v26  ;;  %v1535_v26 = vpack.c.bf16 %v847_v15, %v846_v9 }
 0x5a4   :  { %1486 = vmatprep.subr.bf16.mxu0 %v1749_v27  ;;  %v1537_v27 = vpack.c.bf16 %v865_v21, %v864_v20 }
 0x5a5   :  { %1536 = vmatpush3.bf16.msra.mxu1 %v1535_v26 }
 0x5a6   :  { %1538 = vmatprep.subr.bf16.mxu1 %v1537_v27 }
 0x5a7   :  { %1488 = vmatpush1.bf16.msra.mxu0 %v1764_v32  ;;  %v848_v32 = vld [vmem:[%s2386_s4 + $0x10] sm:$0xff] }
 0x5a8   :  { %1490 = vmatprep.subr.bf16.mxu0 %v1773_v35  ;;  %v849_v35 = vld [vmem:[%s2386_s4 + $0x18] sm:$0xff] }
 0x5ab   :  { %1492 = vmatpush1.bf16.msra.mxu0 %v1794_v44  ;;  %v866_v44 = vld [vmem:[%s2386_s4 + $0xa0] sm:$0xff] }
 0x5ac   :  { %1494 = vmatprep.subr.bf16.mxu0 %v1806_v48  ;;  %v867_v48 = vld [vmem:[%s2386_s4 + $0xa8] sm:$0xff] }
 0x5af   :  { %1496 = vmatpush1.bf16.msra.mxu0 %v1827_v57  ;;  %v1539_v57 = vpack.c.bf16 %v849_v35, %v848_v32 }
 0x5b0   :  { %1498 = vmatprep.subr.bf16.mxu0 %v1830_v58  ;;  %v1541_v58 = vpack.c.bf16 %v867_v48, %v866_v44 }
 0x5b1   :  { %1540 = vmatpush3.bf16.msra.mxu1 %v1539_v57 }
 0x5b2   :  { %1542 = vmatprep.subr.bf16.mxu1 %v1541_v58 }
 0x5b3   :  { %1500 = vmatpush1.bf16.msra.mxu0 %v1852_v1  ;;  %v850_v1 = vld [vmem:[%s2386_s4 + $0x20] sm:$0xff] }
 0x5b4   :  { %1502 = vmatprep.subr.bf16.mxu0 %v1855_v2  ;;  %v851_v2 = vld [vmem:[%s2386_s4 + $0x28] sm:$0xff] }
 0x5b7   :  { %1504 = vmatpush1.bf16.msra.mxu0 %v1875_v11  ;;  %v868_v11 = vld [vmem:[%s2386_s4 + $0xb0] sm:$0xff] }
 0x5b8   :  { %1506 = vmatprep.subr.bf16.mxu0 %v1879_v12  ;;  %v869_v12 = vld [vmem:[%s2386_s4 + $0xb8] sm:$0xff] }
 0x5bb   :  { %1508 = vmatpush1.bf16.msra.mxu0 %v1895_v19  ;;  %v1543_v19 = vpack.c.bf16 %v851_v2, %v850_v1 }
 0x5bc   :  { %1510 = vmatprep.subr.bf16.mxu0 %v1899_v22  ;;  %v1545_v22 = vpack.c.bf16 %v869_v12, %v868_v11 }
 0x5bd   :  { %1544 = vmatpush3.bf16.msra.mxu1 %v1543_v19 }
 0x5be   :  { %1546 = vmatprep.subr.bf16.mxu1 %v1545_v22 }
 0x5bf   :  { %1512 = vmatpush1.bf16.msra.mxu0 %v1915_v29  ;;  %v852_v29 = vld [vmem:[%s2386_s4 + $0x30] sm:$0xff] }
 0x5c0   :  { %1514 = vmatprep.subr.bf16.mxu0 %v1919_v30  ;;  %v853_v30 = vld [vmem:[%s2386_s4 + $0x38] sm:$0xff] }
 0x5c3   :  { %1516 = vmatpush1.bf16.msra.mxu0 %v1935_v37  ;;  %v1547_v37 = vpack.c.bf16 %v853_v30, %v852_v29 }
 0x5c4   :  { %1518 = vmatprep.subr.bf16.mxu0 %v1939_v38 }
 0x5c5   :  { %1548 = vmatpush3.bf16.msra.mxu1 %v1547_v37 }
 0x5c7   :  { %1520 = vmatpush1.bf16.msra.mxu0 %v1955_v43 }
 0x5c8   :  { %1522 = vmatprep.subr.bf16.mxu0 %v1959_v45 }
 0x5cb   :  { %1524 = vmatpush1.bf16.msra.mxu0 %v1975_v51 }
 0x5cc   :  { %1526 = vmatprep.subr.bf16.mxu0 %v1979_v52 }
 0x5cf   :  { %1528 = vmatpush1.bf16.msra.mxu0 %v1995_v59 }
 0x5d0   :  { %1530 = vmatprep.subr.bf16.mxu0 %v1999_v60  ;;  %v870_v60 = vld [vmem:[%s2386_s4 + $0xc0] sm:$0xff] }
 0x5d3   :  { %1532 = vmatpush1.bf16.msra.mxu0 %v2009_v63  ;;  %v871_v63 = vld [vmem:[%s2386_s4 + $0xc8] sm:$0xff] }
 0x5d4   :  { %v1549_v13 = vpack.c.bf16 %v871_v63, %v870_v60 }
 0x5d6   :  { %1550 = vmatprep.subr.bf16.mxu1 %v1549_v13 }
 0x5d7   :  { %1552 = vmatpush3.bf16.msra.mxu1 %v1551_v24 }
 0x5d8   :  { %1554 = vmatprep.subr.bf16.mxu1 %v1553_v31 }
 0x5db   :  { %1556 = vmatpush3.bf16.msra.mxu1 %v1555_v36 }
 0x5dc   :  { %1558 = vmatprep.subr.bf16.mxu1 %v1557_v42 }
 0x5df   :  { %1560 = vmatpush3.bf16.msra.mxu1 %v1559_v50 }
 0x5e0   :  { %1562 = vmatprep.subr.bf16.mxu1 %v1561_v3 }
 0x5e3   :  { %1564 = vmatpush3.bf16.msra.mxu1 %v1563_v55 }
 0x669   :  { %v766_v38 = vpop.f32.mrb[12].mxu0 }
 0x66a   :  { %v1585_v43 = vadd.f32 %v766_v38, %v2072_v18  ;;  %v768_v45 = vpop.f32.mrb[13].mxu0 }
 0x66b   :  { %v1586_v51 = vadd.f32 %v768_v45, %v2074_v23 }
 0x66d   :  { %1622 = vtanh.f32 %v1586_v51 }
 0x66e   :  { %1624 = vtanh.f32 %v1585_v43 }
 0x677   :  { %v1623_v52 = vpop.eup %1622 }
 0x678   :  { %v1625_v59 = vpop.eup %1624  ;;  %837 = vmatprep.mubr.f32.mxu0 %v1623_v52 }
 0x679   :  { %838 = vmatmul.mubr.f32.vlgmr.msra.gmra.mrb[14].mxu0 %v1625_v59 }
 0x74c   :  { %v839_v56 = vpop.f32.mrb[14].mxu0 }
 0x74d   :  { %v1587_v61 = vadd.f32 %v839_v56, %v2072_v18  ;;  %v841_v62 = vpop.f32.mrb[15].mxu0 }
 0x74e   :  { %v1588_v0 = vadd.f32 %v841_v62, %v2074_v23 }
 0x750   :  { %1626 = vtanh.f32 %v1588_v0 }
 0x751   :  { %1628 = vtanh.f32 %v1587_v61 }
 0x75a   :  { %v1627_v5 = vpop.eup %1626 }
 0x75b   :  { %v1629_v6 = vpop.eup %1628  ;;  %949 = vmatprep.mubr.f32.mxu1 %v1627_v5 }
 0x75c   :  { %950 = vmatmul.mubr.f32.vlgmr.msra.gmra.mrb[8].mxu1 %v1629_v6 }
 0x82f   :  { %v1010_v7 = vpop.f32.mrb[8].mxu1 }
 0x830   :  { %v1011_v4 = vpop.f32.mrb[9].mxu1 }
 0x831   :  { %v1012_v8 = vadd.f32 %v1011_v4, %v1010_v7 }
 0x833   :  { %v952_v9 = vadd.f32 %v1012_v8, %v976_v10 }
 0x835   :  { %v977_v14 = vmul.f32 -1.442695, %v952_v9 }
 0x837   :  { %1630 = vpow2.f32 %v977_v14 }
 0x841   :  { %v1631_v18 = vpop.eup %1630 }
 0x842   :  { %v958_v15 = vadd.f32 1.0, %v1631_v18 }
 0x844   :  { %1632 = vrcp.f32 %v958_v15 }
 0x84e   :  { %v1633_v23 = vpop.eup %1632 }
 0x84f   :  { %961 = vst.msk [vmem:[%s2388_s6] sm:$0xff] %vm53_vm1, %v1633_v23 }

</bundles_post_ra>
